<compile_context>
chip_gen: v7x
topology: tpu7x:2x2x1
jax: 0.10.0
libtpu: 0.0.40
codegen_flags: <defaults>
</compile_context>

<pallas_src>
import functools

import jax
import jax.numpy as jnp
from jax.experimental import pallas as pl
from jax.experimental.pallas import tpu as pltpu

BN_EPS = 1e-5
_NEG_BIG = -1e30  # mask value for padded output columns (exp underflows to 0)


def _dtnn_kernel(x_ref, w1_ref, w2_ref, w3_ref, vec_ref, out_ref):
    """Whole forward pass for one (batch, feat) block resident in VMEM.

    vec_ref rows: 0=g1, 1=beta1, 2=g2, 3=beta2, 4=b3 (padded cols = -1e30).
    """
    x = x_ref[...]                                   # (B, D_in) f32
    vecs = vec_ref[...]                              # (8, P)    f32
    H1 = w1_ref.shape[1]
    H2 = w2_ref.shape[1]
    OP = w3_ref.shape[1]                             # lane-padded output width

    # ---- fc1 (bias dropped: cancels under batch-stat BN) + BN1 + ReLU ----
    h1 = jnp.dot(x, w1_ref[...], preferred_element_type=jnp.float32)
    mu1 = jnp.mean(h1, axis=0, keepdims=True)                    # (1, H1)
    var1 = jnp.mean(h1 * h1, axis=0, keepdims=True) - mu1 * mu1  # biased var
    scale1 = vecs[0:1, :H1] * jax.lax.rsqrt(var1 + BN_EPS)       # gamma folded
    shift1 = vecs[1:2, :H1] - mu1 * scale1                       # beta folded
    h1 = jnp.maximum(h1 * scale1 + shift1, 0.0)

    # ---- fc2 (bias dropped) + BN2 + ReLU ---------------------------------
    h2 = jnp.dot(h1, w2_ref[...], preferred_element_type=jnp.float32)
    mu2 = jnp.mean(h2, axis=0, keepdims=True)
    var2 = jnp.mean(h2 * h2, axis=0, keepdims=True) - mu2 * mu2
    scale2 = vecs[2:3, :H2] * jax.lax.rsqrt(var2 + BN_EPS)
    shift2 = vecs[3:4, :H2] - mu2 * scale2
    h2 = jnp.maximum(h2 * scale2 + shift2, 0.0)

    # ---- fc3 + softmax(dim=1) over the real columns ----------------------
    # Padded weight columns are zero; padded b3 entries are -1e30, so their
    # exp is exactly 0 and they contribute nothing to the row sum.
    logits = jnp.dot(h2, w3_ref[...], preferred_element_type=jnp.float32)
    logits = logits + vecs[4:5, :OP]                 # (B, OP)
    m = jnp.max(logits, axis=1, keepdims=True)
    e = jnp.exp(logits - m)
    s = jnp.sum(e, axis=1, keepdims=True)
    r = pl.reciprocal(s, approx=True)                # EUP slot, ~2^-12 rel err
    r = r * (2.0 - s * r)                            # one Newton step -> f32
    out_ref[...] = e * r


@functools.partial(jax.jit, static_argnames=("out_dim",))
def _dtnn_forward_prepared(x, w1, w2, w3p, slab, *, out_dim):
    batch = x.shape[0]
    padded_out = w3p.shape[1]
    vmem = pl.BlockSpec(memory_space=pltpu.MemorySpace.VMEM)
    out = pl.pallas_call(
        _dtnn_kernel,
        out_shape=jax.ShapeDtypeStruct((batch, padded_out), jnp.float32),
        in_specs=[vmem] * 5,
        out_specs=vmem,
        compiler_params=pltpu.CompilerParams(
            vmem_limit_bytes=32 * 1024 * 1024),
    )(x, w1, w2, w3p, slab)
    return out[:, :out_dim]


def _round_up(n, m):
    return ((n + m - 1) // m) * m


def prepare_params(params):
    """Pack per-feature vectors into one (8, P) slab and lane-pad w3/b3.

    b1/b2 are intentionally NOT included: they cancel exactly under
    training-mode BatchNorm (verified against the full reference below).
    """
    H1 = params["w1"].shape[1]
    H2 = params["w2"].shape[1]
    O = params["w3"].shape[1]
    OP = _round_up(O, 128)
    P = _round_up(max(H1, H2, OP), 128)

    def row(v):
        v = v.reshape(-1)
        return jnp.pad(v, (0, P - v.shape[0]))

    b3 = params["b3"].reshape(-1)
    b3_masked = jnp.pad(b3, (0, P - O), constant_values=_NEG_BIG)

    slab = jnp.stack([
        row(params["g1"]), row(params["beta1"]),
        row(params["g2"]), row(params["beta2"]),
        b3_masked,
    ])
    slab = jnp.pad(slab, ((0, 8 - slab.shape[0]), (0, 0)))       # (8, P)
    w3p = jnp.pad(params["w3"], ((0, 0), (0, OP - O)))           # (H2, OP)
    return params["w1"], params["w2"], w3p, slab, O


def dtnn_forward(x, params):
    w1, w2, w3p, slab, out_dim = prepare_params(params)
    return _dtnn_forward_prepared(x, w1, w2, w3p, slab, out_dim=out_dim)


def init_params(key, input_size, hidden_dim1, hidden_dim2, output_dim):
    """Deterministic synthetic init matching the PyTorch module's shapes.

    Linear weights are stored transposed: (in_features, out_features).
    Biases / BN params stored as (1, features) rows.
    """
    k1, k2, k3, k4, k5, k6 = jax.random.split(key, 6)

    def linear(kw, kb, fan_in, fan_out):
        bound = 1.0 / jnp.sqrt(fan_in)
        w = jax.random.uniform(kw, (fan_in, fan_out), jnp.float32, -bound, bound)
        b = jax.random.uniform(kb, (1, fan_out), jnp.float32, -bound, bound)
        return w, b

    w1, b1 = linear(k1, k2, input_size, hidden_dim1)
    w2, b2 = linear(k3, k4, hidden_dim1, hidden_dim2)
    w3, b3 = linear(k5, k6, hidden_dim2, output_dim)

    return dict(
        w1=w1, b1=b1,
        g1=jnp.ones((1, hidden_dim1), jnp.float32),
        beta1=jnp.zeros((1, hidden_dim1), jnp.float32),
        w2=w2, b2=b2,
        g2=jnp.ones((1, hidden_dim2), jnp.float32),
        beta2=jnp.zeros((1, hidden_dim2), jnp.float32),
        w3=w3, b3=b3,
    )


def dtnn_reference(x, p):
    """Pure-JAX reference with the FULL PyTorch math (incl. fc1/fc2 biases)."""
    def bn(h, g, b):
        mu = jnp.mean(h, axis=0, keepdims=True)
        var = jnp.mean((h - mu) ** 2, axis=0, keepdims=True)
        return (h - mu) / jnp.sqrt(var + BN_EPS) * g + b

    h1 = jnp.maximum(bn(x @ p["w1"] + p["b1"], p["g1"], p["beta1"]), 0.0)
    h2 = jnp.maximum(bn(h1 @ p["w2"] + p["b2"], p["g2"], p["beta2"]), 0.0)
    logits = h2 @ p["w3"] + p["b3"]
    return jax.nn.softmax(logits, axis=1)


if __name__ == "__main__":
    key = jax.random.PRNGKey(0)
    kx, kp = jax.random.split(key)

    batch, input_size = 8, 16
    hidden_dim1, hidden_dim2, output_dim = 32, 16, 4

    x = jax.random.normal(kx, (batch, input_size), jnp.float32)
    params = init_params(kp, input_size, hidden_dim1, hidden_dim2, output_dim)

    out = dtnn_forward(x, params)
    out = jax.block_until_ready(out)

    ref = dtnn_reference(x, params)
    assert out.shape == (batch, output_dim)
    assert jnp.allclose(out, ref, atol=1e-5, rtol=1e-5), (
        f"mismatch: max abs err {jnp.max(jnp.abs(out - ref))}")
    # rows of a softmax output must sum to 1
    assert jnp.allclose(jnp.sum(out, axis=1), 1.0, atol=1e-5)

    print("KERNEL_OK")
</pallas_src>

<mosaic_0001>
module attributes {stable_mosaic.version = 11 : i64} {
  func.func @_dtnn_kernel(%arg0: memref<8x16xf32, #tpu.memory_space<vmem>>, %arg1: memref<16x32xf32, #tpu.memory_space<vmem>>, %arg2: memref<32x16xf32, #tpu.memory_space<vmem>>, %arg3: memref<16x128xf32, #tpu.memory_space<vmem>>, %arg4: memref<8x128xf32, #tpu.memory_space<vmem>>, %arg5: memref<8x128xf32, #tpu.memory_space<vmem>>) attributes {dimension_semantics = [], scalar_prefetch = 0 : i64, scratch_operands = 0 : i64, tpu.core_type = #tpu.core_type<tc>} {
    %c0 = arith.constant 0 : index
    %c0_0 = arith.constant 0 : index
    %0 = vector.load %arg0[%c0, %c0_0] : memref<8x16xf32, #tpu.memory_space<vmem>>, vector<8x16xf32>
    %c0_1 = arith.constant 0 : index
    %c0_2 = arith.constant 0 : index
    %1 = vector.load %arg4[%c0_1, %c0_2] : memref<8x128xf32, #tpu.memory_space<vmem>>, vector<8x128xf32>
    %c0_3 = arith.constant 0 : index
    %c0_4 = arith.constant 0 : index
    %2 = vector.load %arg1[%c0_3, %c0_4] : memref<16x32xf32, #tpu.memory_space<vmem>>, vector<16x32xf32>
    %cst = arith.constant dense<0.000000e+00> : vector<8x32xf32>
    %3 = tpu.matmul %0, %2, %cst {dimension_numbers = #tpu.dot_dimension_numbers<[1], [0], [0], [1], [0, 0, 1, 1], [], []>} : vector<8x16xf32>, vector<16x32xf32>, vector<8x32xf32> -> vector<8x32xf32>
    %cst_5 = arith.constant dense<0.000000e+00> : vector<32xf32>
    %4 = vector.multi_reduction <add>, %3, %cst_5 [0] : vector<8x32xf32> to vector<32xf32>
    %5 = vector.shape_cast %4 : vector<32xf32> to vector<1x32xf32>
    %cst_6 = arith.constant 8.000000e+00 : f32
    %6 = vector.broadcast %cst_6 : f32 to vector<1x32xf32>
    %7 = arith.divf %5, %6 : vector<1x32xf32>
    %8 = arith.mulf %3, %3 : vector<8x32xf32>
    %cst_7 = arith.constant dense<0.000000e+00> : vector<32xf32>
    %9 = vector.multi_reduction <add>, %8, %cst_7 [0] : vector<8x32xf32> to vector<32xf32>
    %10 = vector.shape_cast %9 : vector<32xf32> to vector<1x32xf32>
    %cst_8 = arith.constant 8.000000e+00 : f32
    %11 = vector.broadcast %cst_8 : f32 to vector<1x32xf32>
    %12 = arith.divf %10, %11 : vector<1x32xf32>
    %13 = arith.mulf %7, %7 : vector<1x32xf32>
    %14 = arith.subf %12, %13 : vector<1x32xf32>
    %15 = vector.extract_strided_slice %1 {offsets = [0, 0], sizes = [1, 32], strides = [1, 1]} : vector<8x128xf32> to vector<1x32xf32>
    %cst_9 = arith.constant 9.99999974E-6 : f32
    %16 = vector.broadcast %cst_9 : f32 to vector<1x32xf32>
    %17 = arith.addf %14, %16 : vector<1x32xf32>
    %18 = math.rsqrt %17 : vector<1x32xf32>
    %19 = arith.mulf %15, %18 : vector<1x32xf32>
    %20 = vector.extract_strided_slice %1 {offsets = [1, 0], sizes = [1, 32], strides = [1, 1]} : vector<8x128xf32> to vector<1x32xf32>
    %21 = arith.mulf %7, %19 : vector<1x32xf32>
    %22 = arith.subf %20, %21 : vector<1x32xf32>
    %23 = vector.broadcast %19 : vector<1x32xf32> to vector<8x32xf32>
    %24 = arith.mulf %3, %23 : vector<8x32xf32>
    %25 = vector.broadcast %22 : vector<1x32xf32> to vector<8x32xf32>
    %26 = arith.addf %24, %25 : vector<8x32xf32>
    %cst_10 = arith.constant 0.000000e+00 : f32
    %27 = vector.broadcast %cst_10 : f32 to vector<8x32xf32>
    %28 = arith.maximumf %26, %27 : vector<8x32xf32>
    %c0_11 = arith.constant 0 : index
    %c0_12 = arith.constant 0 : index
    %29 = vector.load %arg2[%c0_11, %c0_12] : memref<32x16xf32, #tpu.memory_space<vmem>>, vector<32x16xf32>
    %cst_13 = arith.constant dense<0.000000e+00> : vector<8x16xf32>
    %30 = tpu.matmul %28, %29, %cst_13 {dimension_numbers = #tpu.dot_dimension_numbers<[1], [0], [0], [1], [0, 0, 1, 1], [], []>} : vector<8x32xf32>, vector<32x16xf32>, vector<8x16xf32> -> vector<8x16xf32>
    %cst_14 = arith.constant dense<0.000000e+00> : vector<16xf32>
    %31 = vector.multi_reduction <add>, %30, %cst_14 [0] : vector<8x16xf32> to vector<16xf32>
    %32 = vector.shape_cast %31 : vector<16xf32> to vector<1x16xf32>
    %cst_15 = arith.constant 8.000000e+00 : f32
    %33 = vector.broadcast %cst_15 : f32 to vector<1x16xf32>
    %34 = arith.divf %32, %33 : vector<1x16xf32>
    %35 = arith.mulf %30, %30 : vector<8x16xf32>
    %cst_16 = arith.constant dense<0.000000e+00> : vector<16xf32>
    %36 = vector.multi_reduction <add>, %35, %cst_16 [0] : vector<8x16xf32> to vector<16xf32>
    %37 = vector.shape_cast %36 : vector<16xf32> to vector<1x16xf32>
    %cst_17 = arith.constant 8.000000e+00 : f32
    %38 = vector.broadcast %cst_17 : f32 to vector<1x16xf32>
    %39 = arith.divf %37, %38 : vector<1x16xf32>
    %40 = arith.mulf %34, %34 : vector<1x16xf32>
    %41 = arith.subf %39, %40 : vector<1x16xf32>
    %42 = vector.extract_strided_slice %1 {offsets = [2, 0], sizes = [1, 16], strides = [1, 1]} : vector<8x128xf32> to vector<1x16xf32>
    %cst_18 = arith.constant 9.99999974E-6 : f32
    %43 = vector.broadcast %cst_18 : f32 to vector<1x16xf32>
    %44 = arith.addf %41, %43 : vector<1x16xf32>
    %45 = math.rsqrt %44 : vector<1x16xf32>
    %46 = arith.mulf %42, %45 : vector<1x16xf32>
    %47 = vector.extract_strided_slice %1 {offsets = [3, 0], sizes = [1, 16], strides = [1, 1]} : vector<8x128xf32> to vector<1x16xf32>
    %48 = arith.mulf %34, %46 : vector<1x16xf32>
    %49 = arith.subf %47, %48 : vector<1x16xf32>
    %50 = vector.broadcast %46 : vector<1x16xf32> to vector<8x16xf32>
    %51 = arith.mulf %30, %50 : vector<8x16xf32>
    %52 = vector.broadcast %49 : vector<1x16xf32> to vector<8x16xf32>
    %53 = arith.addf %51, %52 : vector<8x16xf32>
    %cst_19 = arith.constant 0.000000e+00 : f32
    %54 = vector.broadcast %cst_19 : f32 to vector<8x16xf32>
    %55 = arith.maximumf %53, %54 : vector<8x16xf32>
    %c0_20 = arith.constant 0 : index
    %c0_21 = arith.constant 0 : index
    %56 = vector.load %arg3[%c0_20, %c0_21] : memref<16x128xf32, #tpu.memory_space<vmem>>, vector<16x128xf32>
    %cst_22 = arith.constant dense<0.000000e+00> : vector<8x128xf32>
    %57 = tpu.matmul %55, %56, %cst_22 {dimension_numbers = #tpu.dot_dimension_numbers<[1], [0], [0], [1], [0, 0, 1, 1], [], []>} : vector<8x16xf32>, vector<16x128xf32>, vector<8x128xf32> -> vector<8x128xf32>
    %58 = vector.extract_strided_slice %1 {offsets = [4, 0], sizes = [1, 128], strides = [1, 1]} : vector<8x128xf32> to vector<1x128xf32>
    %59 = vector.broadcast %58 : vector<1x128xf32> to vector<8x128xf32>
    %60 = arith.addf %57, %59 : vector<8x128xf32>
    %cst_23 = arith.constant dense<0xFF800000> : vector<8xf32>
    %61 = vector.multi_reduction <maximumf>, %60, %cst_23 [1] : vector<8x128xf32> to vector<8xf32>
    %62 = vector.shape_cast %61 : vector<8xf32> to vector<8x1xf32>
    %63 = vector.broadcast %62 : vector<8x1xf32> to vector<8x128xf32>
    %64 = arith.subf %60, %63 : vector<8x128xf32>
    %65 = math.exp %64 : vector<8x128xf32>
    %cst_24 = arith.constant dense<0.000000e+00> : vector<8xf32>
    %66 = vector.multi_reduction <add>, %65, %cst_24 [1] : vector<8x128xf32> to vector<8xf32>
    %67 = vector.shape_cast %66 : vector<8xf32> to vector<8x1xf32>
    %68 = tpu.reciprocal %67 {approx = true} : vector<8x1xf32> -> vector<8x1xf32>
    %69 = arith.mulf %67, %68 : vector<8x1xf32>
    %cst_25 = arith.constant 2.000000e+00 : f32
    %70 = vector.broadcast %cst_25 : f32 to vector<8x1xf32>
    %71 = arith.subf %70, %69 : vector<8x1xf32>
    %72 = arith.mulf %68, %71 : vector<8x1xf32>
    %73 = vector.broadcast %72 : vector<8x1xf32> to vector<8x128xf32>
    %74 = arith.mulf %65, %73 : vector<8x128xf32>
    %c0_26 = arith.constant 0 : index
    %c0_27 = arith.constant 0 : index
    %75 = vector.load %arg5[%c0_26, %c0_27] : memref<8x128xf32, #tpu.memory_space<vmem>>, vector<8x128xf32>
    tpu.vector_store %arg5[%c0_26, %c0_27], %74 {strides = array<i32>} : memref<8x128xf32, #tpu.memory_space<vmem>>, vector<8x128xf32>,
    return
  }
}

</mosaic_0001>

<bundles_post_ra>
// kernel: _dtnn_forward_prepared.1
= control target key start
LH: loop header
LB: loop body
LE: loop exit
PB: predicated region body
PF: predicated region fallthrough
CT: control target
= control target key end

     0   :  { %v411_v0 = vmov 0.0|0.0   ;;  %vm412_vm0 = vmmov 0   ;;  %v413_v3 = vmov 0.0   ;;  %vm24_vm1 = vcmask 130048   ;;  %s484_s1 = inlined_call_operand.vmem [shape: f32[16,32], index: 1, kind: input, shape index: {}]   ;;  %s485_s0 = inlined_call_operand.vmem [shape: f32[8,16], index: 0, kind: input, shape index: {}]   ;;  %s486_s2 = inlined_call_operand.vmem [shape: f32[32,16], index: 2, kind: input, shape index: {}]   ;;  %s487_s4 = inlined_call_operand.vmem [shape: f32[8,128], index: 4, kind: input, shape index: {}]   ;;  %s488_s3 = inlined_call_operand.vmem [shape: f32[16,128], index: 3, kind: input, shape index: {}]   ;;  %s489_s5 = inlined_call_operand.vmem [shape: f32[8,128], index: 5, kind: output, shape index: {}]  }
   0x1   :  { %388 = vmatprep.subr.bf16.mxu0 %v411_v0  ;;  %v22_v1 = vld [vmem:[%s484_s1] sm:$0xff]  ;;  %v23_v2 = vld [vmem:[%s484_s1 + $0x8] sm:$0xff]  ;;  %367 = vmatprep.mubr.msk.f32.mxu0 %vm412_vm0, %v413_v3  ;;  %v140_v9 = vld [vmem:[%s486_s2 + $0x10] sm:$0xff]  ;;  %vm98_vm2 = vcmask 261120   ;;  %v127_v34 = vlaneseq }
   0x2   :  { %v389_v4 = vpack.c.bf16 %v23_v2, %v22_v1  ;;  %391 = vmatprep.subr.bf16.mxu1 %v411_v0  ;;  %378 = vmatprep.mubr.msk.f32.mxu1 %vm412_vm0, %v413_v3  ;;  %v20_v5 = vld [vmem:[%s485_s0] sm:$0xff]  ;;  %v139_v7 = vld [vmem:[%s486_s2 + $0x8] sm:$0xff]  ;;  %v141_v10 = vld [vmem:[%s486_s2 + $0x18] sm:$0xff] }
   0x3   :  { %v138_v6 = vld [vmem:[%s486_s2] sm:$0xff]  ;;  %v395_v11 = vpack.c.bf16 %v141_v10, %v140_v9  ;;  %v128_v35 = vshrl.u32 %v127_v34, 7  ;;  %v254_v50 = vld [vmem:[%s488_s3 + $0x8] sm:$0xff] }
   0x4   :  { %390 = vmatpush3.bf16.msra.mxu0 %v389_v4  ;;  %v392_v8 = vpack.c.bf16 %v139_v7, %v138_v6  ;;  %v21_v36 = vld [vmem:[%s487_s4] sm:$0xff] }
   0x5   :  { %397 = vmatprep.subr.bf16.mxu0 %v411_v0  ;;  %v129_v39 = vsub.s32 0, %v128_v35  ;;  %v134_v43 = vsub.s32 1, %v128_v35  ;;  %v253_v49 = vld [vmem:[%s488_s3] sm:$0xff] }
   0x6   :  { %393 = vmatpush3.bf16.msra.mxu1 %v392_v8  ;;  %v398_v51 = vpack.c.bf16 %v254_v50, %v253_v49 }
   0x7   :  { %368 = vmatmul.mubr.msk.f32.vlgmr.msra.gmra.mrb[0].mxu0 %vm24_vm1, %v20_v5  ;;  %394 = vmatprep.subr.bf16.mxu1 %v411_v0 }
   0x8   :  { %385 = vmatprep.mubr.msk.f32.mxu0 %vm412_vm0, %v413_v3  ;;  %399 = vmatpush3.bf16.msra.mxu0 %v398_v51 }
   0xa   :  { %396 = vmatpush3.bf16.msra.mxu1 %v395_v11 }
  0xda   :  { %v94_v12 = vpop.f32.mrb[0].mxu0 }
  0xdb   :  { %v99_v13 = vsel %vm98_vm2, %v94_v12, 0.0  ;;  %v108_v14 = vmul.f32 %v94_v12, %v94_v12  ;;  %v369_v15 = vpop.f32.mrb[1].mxu0 }
  0xdc   :  { %v100_v16 = vrot.slane %v99_v13, 4 }
  0xdd   :  { %v109_v17 = vsel %vm98_vm2, %v108_v14, 0.0 }
  0xde   :  { %v101_v18 = vadd.f32 %v100_v16, %v99_v13  ;;  %v110_v19 = vrot.slane %v109_v17, 4  ;;  %v249_v16 = vsub.s32 3, %v128_v35 }
  0xe0   :  { %v102_v20 = vrot.slane %v101_v18, 2  ;;  %v111_v21 = vadd.f32 %v110_v19, %v109_v17 }
  0xe2   :  { %v103_v22 = vadd.f32 %v102_v20, %v101_v18  ;;  %v112_v23 = vrot.slane %v111_v21, 2 }
  0xe4   :  { %v104_v24 = vrot.slane %v103_v22, 1  ;;  %v113_v25 = vadd.f32 %v112_v23, %v111_v21 }
  0xe6   :  { %v105_v26 = vadd.f32 %v104_v24, %v103_v22  ;;  %v114_v27 = vrot.slane %v113_v25, 1  ;;  %v257_v22 = vsub.s32 4, %v128_v35 }
  0xe8   :  { %v107_v28 = vmul.f32 0.125, %v105_v26  ;;  %v115_v29 = vadd.f32 %v114_v27, %v113_v25  ;;  %v258_v23 = vrot.slane %v21_v36, %v257_v22 }
  0xea   :  { %v116_v30 = vmul.f32 0.125, %v115_v29  ;;  %v117_v31 = vmul.f32 %v107_v28, %v107_v28 }
  0xec   :  { %v118_v32 = vsub.f32 %v116_v30, %v117_v31 }
  0xee   :  { %v119_v33 = vadd.f32 1e-05, %v118_v32 }
  0xf0   :  { %403 = vrsqrt.f32 %v119_v33 }
  0xfa   :  { %v404_v37 = vpop.eup %403 }
  0xfb   :  { %v121_v38 = vmul.f32 %v404_v37, %v21_v36 }
  0xfd   :  { %v122_v40 = vmul.f32 %v121_v38, %v107_v28  ;;  %v130_v42 = vrot.slane %v121_v38, %v129_v39 }
  0xff   :  { %v124_v41 = vrot.slane %v122_v40, 7  ;;  %v131_v45 = vmul.f32 %v130_v42, %v94_v12  ;;  %v244_v12 = vsub.s32 2, %v128_v35 }
 0x101   :  { %v126_v44 = vsub.f32 %v21_v36, %v124_v41 }
 0x103   :  { %v135_v46 = vrot.slane %v126_v44, %v134_v43 }
 0x105   :  { %v136_v47 = vadd.f32 %v135_v46, %v131_v45 }
 0x107   :  { %v137_v48 = vmax.f32 %v136_v47, 0.0 }
 0x109   :  { %379 = vmatmul.mubr.msk.f32.vlgmr.msra.gmra.mrb[0].mxu1 %vm98_vm2, %v137_v48 }
 0x1dc   :  { %v211_v52 = vpop.f32.mrb[0].mxu1 }
 0x1dd   :  { %v215_v53 = vsel %vm24_vm1, %v211_v52, 0.0  ;;  %v223_v54 = vmul.f32 %v211_v52, %v211_v52  ;;  %v380_v55 = vpop.f32.mrb[1].mxu1 }
 0x1de   :  { %v216_v56 = vrot.slane %v215_v53, 4 }
 0x1df   :  { %v224_v57 = vsel %vm24_vm1, %v223_v54, 0.0 }
 0x1e0   :  { %v217_v58 = vadd.f32 %v216_v56, %v215_v53  ;;  %v225_v59 = vrot.slane %v224_v57, 4 }
 0x1e2   :  { %v218_v60 = vrot.slane %v217_v58, 2  ;;  %v226_v61 = vadd.f32 %v225_v59, %v224_v57 }
 0x1e4   :  { %v219_v62 = vadd.f32 %v218_v60, %v217_v58  ;;  %v227_v63 = vrot.slane %v226_v61, 2 }
 0x1e6   :  { %v220_v0 = vrot.slane %v219_v62, 1  ;;  %v228_v1 = vadd.f32 %v227_v63, %v226_v61 }
 0x1e8   :  { %v221_v2 = vadd.f32 %v220_v0, %v219_v62  ;;  %v229_v3 = vrot.slane %v228_v1, 1 }
 0x1ea   :  { %v222_v4 = vmul.f32 0.125, %v221_v2  ;;  %v230_v5 = vadd.f32 %v229_v3, %v228_v1 }
 0x1ec   :  { %v231_v6 = vmul.f32 0.125, %v230_v5  ;;  %v232_v7 = vmul.f32 %v222_v4, %v222_v4 }
 0x1ee   :  { %v233_v8 = vsub.f32 %v231_v6, %v232_v7 }
 0x1f0   :  { %v234_v9 = vadd.f32 1e-05, %v233_v8 }
 0x1f2   :  { %405 = vrsqrt.f32 %v234_v9 }
 0x1fc   :  { %v406_v10 = vpop.eup %405 }
 0x1fd   :  { %v236_v11 = vmul.f32 %v406_v10, %v21_v36 }
 0x1ff   :  { %v237_v13 = vmul.f32 %v236_v11, %v222_v4  ;;  %v245_v15 = vrot.slane %v236_v11, %v244_v12 }
 0x201   :  { %v239_v14 = vrot.slane %v237_v13, 7  ;;  %v246_v18 = vmul.f32 %v245_v15, %v211_v52 }
 0x203   :  { %v241_v17 = vsub.f32 %v21_v36, %v239_v14 }
 0x205   :  { %v250_v19 = vrot.slane %v241_v17, %v249_v16 }
 0x207   :  { %v251_v20 = vadd.f32 %v250_v19, %v246_v18 }
 0x209   :  { %v252_v21 = vmax.f32 %v251_v20, 0.0 }
 0x20b   :  { %386 = vmatmul.mubr.msk.f32.vlgmr.msra.gmra.mrb[2].mxu0 %vm24_vm1, %v252_v21 }
 0x2de   :  { %v328_v24 = vpop.f32.mrb[2].mxu0 }
 0x2df   :  { %v329_v25 = vadd.f32 %v328_v24, %v258_v23  ;;  %v387_v26 = vpop.f32.mrb[3].mxu0 }
 0x2e1   :  { %332 = vmax.xlane.f32.xlu0 %v329_v25 }
 0x36e   :  { %v333_v27 = vpop.xlane.xlu0 %332 }
 0x36f   :  { %v334_v28 = vsub.f32 %v329_v25, %v333_v27 }
 0x371   :  { %v335_v29 = vmul.f32 1.442695, %v334_v28 }
 0x373   :  { %407 = vpow2.f32 %v335_v29 }
 0x37d   :  { %v408_v30 = vpop.eup %407 }
 0x37e   :  { %337 = vadd.xlane.f32.xlu0 %v408_v30 }
 0x40b   :  { %v338_v31 = vpop.xlane.xlu0 %337 }
 0x40c   :  { %409 = vrcp.f32 %v338_v31 }
 0x416   :  { %v410_v32 = vpop.eup %409 }
 0x417   :  { %v340_v33 = vmul.f32 %v410_v32, %v338_v31 }
 0x419   :  { %v341_v34 = vsub.f32 2.0, %v340_v33 }
 0x41b   :  { %v342_v37 = vmul.f32 %v410_v32, %v341_v34 }
 0x41d   :  { %v343_v38 = vmul.f32 %v408_v30, %v342_v37 }
 0x41f   :  { %344 = vst [vmem:[%s489_s5] sm:$0xff] %v343_v38 }

</bundles_post_ra>
